<compile_context>
chip_gen: v6e
topology: v6e:2x2x1
jax: 0.10.0
libtpu: 0.0.40
codegen_flags: <defaults>
</compile_context>

<pallas_src>
import functools
import jax
import jax.numpy as jnp
from jax import lax
from jax.experimental import pallas as pl
from jax.experimental.pallas import tpu as pltpu


def _pick_tile(n, candidates=(512, 256, 128)):
    """Largest MXU-friendly tile dividing n (falls back to the full axis).

    Note: sequence lengths that are not multiples of 128 fall back to a single
    full-axis tile; padding/masking for ragged N is future work.
    """
    for t in candidates:
        if n % t == 0:
            return t
    return n


# ----------------------------------------------------------------------------
# Kernel 1: lane-dense QKV projection  ->  Q/K/V in (B, H, N, hd) bf16 layout
# ----------------------------------------------------------------------------
def _qkv_proj_kernel(x_ref, wq_ref, wk_ref, wv_ref, b_ref,
                     q_ref, k_ref, v_ref, *, num_heads, head_dim):
    x = x_ref[0]                                              # (TR, C) bf16
    # Full-width (K = C) lane-dense MXU matmuls, f32 accumulation.
    q = jnp.dot(x, wq_ref[...], preferred_element_type=jnp.float32) + b_ref[0]
    k = jnp.dot(x, wk_ref[...], preferred_element_type=jnp.float32) + b_ref[1]
    v = jnp.dot(x, wv_ref[...], preferred_element_type=jnp.float32) + b_ref[2]
    # Static per-head split (compile-time lane slices).  The live set is the
    # three full-width results regardless of H, so a static loop is fine here.
    for hh in range(num_heads):
        lo = hh * head_dim
        q_ref[0, hh] = q[:, lo:lo + head_dim].astype(jnp.bfloat16)
        k_ref[0, hh] = k[:, lo:lo + head_dim].astype(jnp.bfloat16)
        v_ref[0, hh] = v[:, lo:lo + head_dim].astype(jnp.bfloat16)


# ----------------------------------------------------------------------------
# Kernel 2: flash attention (online softmax) + fused per-head output proj
# ----------------------------------------------------------------------------
def _flash_attn_kernel(q_ref, k_ref, v_ref, wout_ref, bout_ref, o_ref,
                       m_scr, l_scr, acc_scr, out_acc, *, out_dtype):
    h = pl.program_id(2)
    ki = pl.program_id(3)
    num_heads = pl.num_programs(2)
    num_kv = pl.num_programs(3)

    @pl.when(ki == 0)
    def _():
        m_scr[...] = jnp.full_like(m_scr, -jnp.inf)
        l_scr[...] = jnp.zeros_like(l_scr)
        acc_scr[...] = jnp.zeros_like(acc_scr)

    @pl.when((h == 0) & (ki == 0))
    def _():
        out_acc[...] = jnp.zeros_like(out_acc)

    q = q_ref[0, 0]                       # (TQ, hd) bf16; scale folded into Wq
    k = k_ref[0, 0]                       # (TKV, hd) bf16
    # Scores via a transposed contraction (no in-kernel k.T), f32 accumulate.
    s = lax.dot_general(q, k, dimension_numbers=(((1,), (1,)), ((), ())),
                        preferred_element_type=jnp.float32)    # (TQ, TKV)

    m_prev = m_scr[...]
    m_new = jnp.maximum(m_prev, jnp.max(s, axis=-1, keepdims=True))
    alpha = jnp.exp(m_prev - m_new)
    p = jnp.exp(s - m_new)                # f32 exp: portable across v5e/v6e/v7x
    l_scr[...] = alpha * l_scr[...] + jnp.sum(p, axis=-1, keepdims=True)
    acc_scr[...] = alpha * acc_scr[...] + jnp.dot(
        p.astype(jnp.bfloat16), v_ref[0, 0], preferred_element_type=jnp.float32)
    m_scr[...] = m_new

    @pl.when(ki == num_kv - 1)
    def _():
        # Post-PV normalization (TQ*hd multiplies, exact divide).
        o_h = (acc_scr[...] / l_scr[...]).astype(jnp.bfloat16)
        # Fused output projection: accumulate this head's contribution.
        # wout_ref is the full (H, hd, C) W_out^T, resident in VMEM; dynamic
        # leading-axis index is a cheap address offset (no lane shuffles).
        out_acc[...] += jnp.dot(o_h, wout_ref[h],
                                preferred_element_type=jnp.float32)

        @pl.when(h == num_heads - 1)
        def _():
            o_ref[0] = (out_acc[...] + bout_ref[...]).astype(out_dtype)


# ----------------------------------------------------------------------------
# Wrapper
# ----------------------------------------------------------------------------
def attention_forward(x, in_proj_weight, in_proj_bias, out_proj_weight,
                      out_proj_bias, num_heads, *, out_dtype=jnp.float32):
    """x: (B, N, C) float32.  Returns (B, N, C) in `out_dtype` (default f32)."""
    B, N, C = x.shape
    H = num_heads
    assert C % H == 0
    hd = C // H
    assert in_proj_weight.shape == (3 * C, C)
    assert in_proj_bias.shape == (3 * C,)
    assert out_proj_weight.shape == (C, C)
    assert out_proj_bias.shape == (C,)
    scale = hd ** (-0.5)

    # ---- host-side weight repacking (done once, outside the kernels) -------
    w3 = in_proj_weight.reshape(3, C, C)            # rows ordered (three, head, hd)
    wq_t = (w3[0].T * scale).astype(jnp.bfloat16)   # (C, C), attn scale folded in
    wk_t = w3[1].T.astype(jnp.bfloat16)
    wv_t = w3[2].T.astype(jnp.bfloat16)
    b3 = in_proj_bias.reshape(3, C).astype(jnp.float32)
    b3 = b3 * jnp.array([scale, 1.0, 1.0], jnp.float32)[:, None]

    wout_heads = out_proj_weight.T.reshape(H, hd, C).astype(jnp.bfloat16)
    bout = out_proj_bias.reshape(1, C).astype(jnp.float32)

    x_bf = x.astype(jnp.bfloat16)

    # ---- kernel 1: QKV projection into (B, H, N, hd) bf16 -------------------
    tr = _pick_tile(N)
    qkv_shape = jax.ShapeDtypeStruct((B, H, N, hd), jnp.bfloat16)
    q, k, v = pl.pallas_call(
        functools.partial(_qkv_proj_kernel, num_heads=H, head_dim=hd),
        out_shape=(qkv_shape, qkv_shape, qkv_shape),
        grid_spec=pltpu.PrefetchScalarGridSpec(
            num_scalar_prefetch=0,
            grid=(B, N // tr),
            in_specs=[
                pl.BlockSpec((1, tr, C), lambda b, r: (b, r, 0)),   # x
                pl.BlockSpec((C, C), lambda b, r: (0, 0)),          # Wq^T (scaled)
                pl.BlockSpec((C, C), lambda b, r: (0, 0)),          # Wk^T
                pl.BlockSpec((C, C), lambda b, r: (0, 0)),          # Wv^T
                pl.BlockSpec((3, C), lambda b, r: (0, 0)),          # biases
            ],
            out_specs=[
                pl.BlockSpec((1, H, tr, hd), lambda b, r: (b, 0, r, 0)),
                pl.BlockSpec((1, H, tr, hd), lambda b, r: (b, 0, r, 0)),
                pl.BlockSpec((1, H, tr, hd), lambda b, r: (b, 0, r, 0)),
            ],
        ),
        compiler_params=pltpu.CompilerParams(
            dimension_semantics=("parallel", "parallel"),
            vmem_limit_bytes=48 * 1024 * 1024),
    )(x_bf, wq_t, wk_t, wv_t, b3)

    # ---- kernel 2: flash attention + fused output projection ----------------
    tq = _pick_tile(N)
    tkv = _pick_tile(N)
    out = pl.pallas_call(
        functools.partial(_flash_attn_kernel, out_dtype=out_dtype),
        out_shape=jax.ShapeDtypeStruct((B, N, C), out_dtype),
        grid_spec=pltpu.PrefetchScalarGridSpec(
            num_scalar_prefetch=0,
            grid=(B, N // tq, H, N // tkv),
            in_specs=[
                pl.BlockSpec((1, 1, tq, hd), lambda b, qi, h, ki: (b, h, qi, 0)),
                pl.BlockSpec((1, 1, tkv, hd), lambda b, qi, h, ki: (b, h, ki, 0)),
                pl.BlockSpec((1, 1, tkv, hd), lambda b, qi, h, ki: (b, h, ki, 0)),
                pl.BlockSpec((H, hd, C), lambda b, qi, h, ki: (0, 0, 0)),   # Wout^T
                pl.BlockSpec((1, C), lambda b, qi, h, ki: (0, 0)),          # bias
            ],
            out_specs=pl.BlockSpec((1, tq, C), lambda b, qi, h, ki: (b, qi, 0)),
            scratch_shapes=[
                pltpu.VMEM((tq, 1), jnp.float32),    # running max  m
                pltpu.VMEM((tq, 1), jnp.float32),    # running sum  l
                pltpu.VMEM((tq, hd), jnp.float32),   # running PV accumulator
                pltpu.VMEM((tq, C), jnp.float32),    # fused out-proj accumulator
            ],
        ),
        compiler_params=pltpu.CompilerParams(
            dimension_semantics=("parallel", "parallel", "arbitrary", "arbitrary"),
            vmem_limit_bytes=48 * 1024 * 1024),
    )(q, k, v, wout_heads, bout)
    return out


def _reference_forward(x, wqkv, bqkv, wout, bout, num_heads):
    """Plain-JAX (f32) replica of the PyTorch forward for verification."""
    B, N, C = x.shape
    hd = C // num_heads
    scale = hd ** (-0.5)
    qkv = jnp.einsum('bnc,dc->bnd', x, wqkv) + bqkv            # (B, N, 3C)
    qkv = qkv.reshape(B, N, 3, num_heads, hd)
    qkv = jnp.transpose(qkv, (2, 0, 3, 1, 4))                  # (3, B, H, N, hd)
    q, k, v = qkv[0] * scale, qkv[1], qkv[2]
    attn = jnp.einsum('bhqd,bhkd->bhqk', q, k)
    attn = jax.nn.softmax(attn, axis=-1)
    o = jnp.einsum('bhqk,bhkd->bhqd', attn, v)                 # (B, H, N, hd)
    o = jnp.transpose(o, (0, 2, 1, 3)).reshape(B, N, C)
    return jnp.einsum('bnc,dc->bnd', o, wout) + bout


def _run_case(B, N, C, H, key):
    kx, kw1, kb1, kw2, kb2 = jax.random.split(key, 5)
    x = jax.random.normal(kx, (B, N, C), dtype=jnp.float32)

    limit_in = (6.0 / (3 * C + C)) ** 0.5
    in_proj_weight = jax.random.uniform(kw1, (3 * C, C), jnp.float32,
                                        -limit_in, limit_in)
    in_proj_bias = jax.random.uniform(kb1, (3 * C,), jnp.float32, -0.1, 0.1)

    limit_out = (1.0 / C) ** 0.5
    out_proj_weight = jax.random.uniform(kw2, (C, C), jnp.float32,
                                         -limit_out, limit_out)
    out_proj_bias = jax.random.uniform(kb2, (C,), jnp.float32, -0.1, 0.1)

    out = attention_forward(x, in_proj_weight, in_proj_bias,
                            out_proj_weight, out_proj_bias, H)
    out = jax.block_until_ready(out)

    ref = _reference_forward(x, in_proj_weight, in_proj_bias,
                             out_proj_weight, out_proj_bias, H)
    assert out.shape == (B, N, C)
    max_err = float(jnp.max(jnp.abs(out - ref)))
    # bf16 matmul inputs -> loosened vs the pure-f32 reference.
    assert jnp.allclose(out, ref, atol=2e-2, rtol=2e-2), \
        f"mismatch vs reference at B={B},N={N},C={C},H={H} (max abs err {max_err})"


if __name__ == "__main__":
    key = jax.random.PRNGKey(0)
    k1, k2 = jax.random.split(key, 2)

    # Small shape matching the module convention (B=2, seq=8, embed=32, heads=4).
    _run_case(B=2, N=8, C=32, H=4, key=k1)
    # A larger shape that exercises the real tiled/(8,128)-aligned path
    # (head_dim=64 < one lane tile, multi-head / multi-step grid).
    _run_case(B=2, N=256, C=256, H=4, key=k2)

    print("KERNEL_OK")
</pallas_src>

<mosaic_0001>
module attributes {stable_mosaic.version = 11 : i64} {
  func.func @_qkv_proj_kernel(%arg0: i32, %arg1: i32, %arg2: memref<1x8x32xbf16, #tpu.memory_space<vmem>>, %arg3: memref<32x32xbf16, #tpu.memory_space<vmem>>, %arg4: memref<32x32xbf16, #tpu.memory_space<vmem>>, %arg5: memref<32x32xbf16, #tpu.memory_space<vmem>>, %arg6: memref<3x32xf32, #tpu.memory_space<vmem>>, %arg7: memref<1x4x8x8xbf16, #tpu.memory_space<vmem>>, %arg8: memref<1x4x8x8xbf16, #tpu.memory_space<vmem>>, %arg9: memref<1x4x8x8xbf16, #tpu.memory_space<vmem>>) attributes {dimension_semantics = [#tpu.dimension_semantics<parallel>, #tpu.dimension_semantics<parallel>], iteration_bounds = array<i64: 2, 1>, scalar_prefetch = 0 : i64, scratch_operands = 0 : i64, tpu.core_type = #tpu.core_type<tc>, window_params = [{transform_indices = @transform_0, window_bounds = array<i64: 1, 8, 32>}, {pipeline_mode = #tpu.pipeline_mode<synchronous>, transform_indices = @transform_1, window_bounds = array<i64: 32, 32>}, {pipeline_mode = #tpu.pipeline_mode<synchronous>, transform_indices = @transform_2, window_bounds = array<i64: 32, 32>}, {pipeline_mode = #tpu.pipeline_mode<synchronous>, transform_indices = @transform_3, window_bounds = array<i64: 32, 32>}, {pipeline_mode = #tpu.pipeline_mode<synchronous>, transform_indices = @transform_4, window_bounds = array<i64: 3, 32>}, {transform_indices = @transform_5, window_bounds = array<i64: 1, 4, 8, 8>}, {transform_indices = @transform_6, window_bounds = array<i64: 1, 4, 8, 8>}, {transform_indices = @transform_7, window_bounds = array<i64: 1, 4, 8, 8>}]} {
    %c0 = arith.constant 0 : index
    %c0_0 = arith.constant 0 : index
    %c0_1 = arith.constant 0 : index
    %0 = vector.load %arg2[%c0, %c0_0, %c0_1] : memref<1x8x32xbf16, #tpu.memory_space<vmem>>, vector<1x8x32xbf16>
    %1 = vector.shape_cast %0 : vector<1x8x32xbf16> to vector<8x32xbf16>
    %c0_2 = arith.constant 0 : index
    %c0_3 = arith.constant 0 : index
    %2 = vector.load %arg3[%c0_2, %c0_3] : memref<32x32xbf16, #tpu.memory_space<vmem>>, vector<32x32xbf16>
    %cst = arith.constant dense<0.000000e+00> : vector<8x32xf32>
    %3 = tpu.matmul %1, %2, %cst {dimension_numbers = #tpu.dot_dimension_numbers<[1], [0], [0], [1], [0, 0, 1, 1], [], []>} : vector<8x32xbf16>, vector<32x32xbf16>, vector<8x32xf32> -> vector<8x32xf32>
    %c0_4 = arith.constant 0 : index
    %c0_5 = arith.constant 0 : index
    %4 = vector.load %arg6[%c0_4, %c0_5] : memref<3x32xf32, #tpu.memory_space<vmem>>, vector<1x32xf32>
    %5 = vector.shape_cast %4 : vector<1x32xf32> to vector<32xf32>
    %6 = vector.shape_cast %5 : vector<32xf32> to vector<1x32xf32>
    %7 = vector.broadcast %6 : vector<1x32xf32> to vector<8x32xf32>
    %8 = arith.addf %3, %7 : vector<8x32xf32>
    %c0_6 = arith.constant 0 : index
    %c0_7 = arith.constant 0 : index
    %9 = vector.load %arg4[%c0_6, %c0_7] : memref<32x32xbf16, #tpu.memory_space<vmem>>, vector<32x32xbf16>
    %cst_8 = arith.constant dense<0.000000e+00> : vector<8x32xf32>
    %10 = tpu.matmul %1, %9, %cst_8 {dimension_numbers = #tpu.dot_dimension_numbers<[1], [0], [0], [1], [0, 0, 1, 1], [], []>} : vector<8x32xbf16>, vector<32x32xbf16>, vector<8x32xf32> -> vector<8x32xf32>
    %c1 = arith.constant 1 : index
    %c0_9 = arith.constant 0 : index
    %11 = vector.load %arg6[%c1, %c0_9] : memref<3x32xf32, #tpu.memory_space<vmem>>, vector<1x32xf32>
    %12 = vector.shape_cast %11 : vector<1x32xf32> to vector<32xf32>
    %13 = vector.shape_cast %12 : vector<32xf32> to vector<1x32xf32>
    %14 = vector.broadcast %13 : vector<1x32xf32> to vector<8x32xf32>
    %15 = arith.addf %10, %14 : vector<8x32xf32>
    %c0_10 = arith.constant 0 : index
    %c0_11 = arith.constant 0 : index
    %16 = vector.load %arg5[%c0_10, %c0_11] : memref<32x32xbf16, #tpu.memory_space<vmem>>, vector<32x32xbf16>
    %cst_12 = arith.constant dense<0.000000e+00> : vector<8x32xf32>
    %17 = tpu.matmul %1, %16, %cst_12 {dimension_numbers = #tpu.dot_dimension_numbers<[1], [0], [0], [1], [0, 0, 1, 1], [], []>} : vector<8x32xbf16>, vector<32x32xbf16>, vector<8x32xf32> -> vector<8x32xf32>
    %c2 = arith.constant 2 : index
    %c0_13 = arith.constant 0 : index
    %18 = vector.load %arg6[%c2, %c0_13] : memref<3x32xf32, #tpu.memory_space<vmem>>, vector<1x32xf32>
    %19 = vector.shape_cast %18 : vector<1x32xf32> to vector<32xf32>
    %20 = vector.shape_cast %19 : vector<32xf32> to vector<1x32xf32>
    %21 = vector.broadcast %20 : vector<1x32xf32> to vector<8x32xf32>
    %22 = arith.addf %17, %21 : vector<8x32xf32>
    %23 = vector.extract_strided_slice %8 {offsets = [0, 0], sizes = [8, 8], strides = [1, 1]} : vector<8x32xf32> to vector<8x8xf32>
    %24 = arith.truncf %23 : vector<8x8xf32> to vector<8x8xbf16>
    %c0_14 = arith.constant 0 : index
    %c0_15 = arith.constant 0 : index
    %c0_16 = arith.constant 0 : index
    %c0_17 = arith.constant 0 : index
    %25 = vector.load %arg7[%c0_14, %c0_15, %c0_16, %c0_17] : memref<1x4x8x8xbf16, #tpu.memory_space<vmem>>, vector<1x1x8x8xbf16>
    %26 = vector.shape_cast %25 : vector<1x1x8x8xbf16> to vector<8x8xbf16>
    %27 = vector.shape_cast %24 : vector<8x8xbf16> to vector<1x1x8x8xbf16>
    tpu.vector_store %arg7[%c0_14, %c0_15, %c0_16, %c0_17], %27 {strides = array<i32>} : memref<1x4x8x8xbf16, #tpu.memory_space<vmem>>, vector<1x1x8x8xbf16>,
    %28 = vector.extract_strided_slice %15 {offsets = [0, 0], sizes = [8, 8], strides = [1, 1]} : vector<8x32xf32> to vector<8x8xf32>
    %29 = arith.truncf %28 : vector<8x8xf32> to vector<8x8xbf16>
    %c0_18 = arith.constant 0 : index
    %c0_19 = arith.constant 0 : index
    %c0_20 = arith.constant 0 : index
    %c0_21 = arith.constant 0 : index
    %30 = vector.load %arg8[%c0_18, %c0_19, %c0_20, %c0_21] : memref<1x4x8x8xbf16, #tpu.memory_space<vmem>>, vector<1x1x8x8xbf16>
    %31 = vector.shape_cast %30 : vector<1x1x8x8xbf16> to vector<8x8xbf16>
    %32 = vector.shape_cast %29 : vector<8x8xbf16> to vector<1x1x8x8xbf16>
    tpu.vector_store %arg8[%c0_18, %c0_19, %c0_20, %c0_21], %32 {strides = array<i32>} : memref<1x4x8x8xbf16, #tpu.memory_space<vmem>>, vector<1x1x8x8xbf16>,
    %33 = vector.extract_strided_slice %22 {offsets = [0, 0], sizes = [8, 8], strides = [1, 1]} : vector<8x32xf32> to vector<8x8xf32>
    %34 = arith.truncf %33 : vector<8x8xf32> to vector<8x8xbf16>
    %c0_22 = arith.constant 0 : index
    %c0_23 = arith.constant 0 : index
    %c0_24 = arith.constant 0 : index
    %c0_25 = arith.constant 0 : index
    %35 = vector.load %arg9[%c0_22, %c0_23, %c0_24, %c0_25] : memref<1x4x8x8xbf16, #tpu.memory_space<vmem>>, vector<1x1x8x8xbf16>
    %36 = vector.shape_cast %35 : vector<1x1x8x8xbf16> to vector<8x8xbf16>
    %37 = vector.shape_cast %34 : vector<8x8xbf16> to vector<1x1x8x8xbf16>
    tpu.vector_store %arg9[%c0_22, %c0_23, %c0_24, %c0_25], %37 {strides = array<i32>} : memref<1x4x8x8xbf16, #tpu.memory_space<vmem>>, vector<1x1x8x8xbf16>,
    %38 = vector.extract_strided_slice %8 {offsets = [0, 8], sizes = [8, 8], strides = [1, 1]} : vector<8x32xf32> to vector<8x8xf32>
    %39 = arith.truncf %38 : vector<8x8xf32> to vector<8x8xbf16>
    %c0_26 = arith.constant 0 : index
    %c1_27 = arith.constant 1 : index
    %c0_28 = arith.constant 0 : index
    %c0_29 = arith.constant 0 : index
    %40 = vector.load %arg7[%c0_26, %c1_27, %c0_28, %c0_29] : memref<1x4x8x8xbf16, #tpu.memory_space<vmem>>, vector<1x1x8x8xbf16>
    %41 = vector.shape_cast %40 : vector<1x1x8x8xbf16> to vector<8x8xbf16>
    %42 = vector.shape_cast %39 : vector<8x8xbf16> to vector<1x1x8x8xbf16>
    tpu.vector_store %arg7[%c0_26, %c1_27, %c0_28, %c0_29], %42 {strides = array<i32>} : memref<1x4x8x8xbf16, #tpu.memory_space<vmem>>, vector<1x1x8x8xbf16>,
    %43 = vector.extract_strided_slice %15 {offsets = [0, 8], sizes = [8, 8], strides = [1, 1]} : vector<8x32xf32> to vector<8x8xf32>
    %44 = arith.truncf %43 : vector<8x8xf32> to vector<8x8xbf16>
    %c0_30 = arith.constant 0 : index
    %c1_31 = arith.constant 1 : index
    %c0_32 = arith.constant 0 : index
    %c0_33 = arith.constant 0 : index
    %45 = vector.load %arg8[%c0_30, %c1_31, %c0_32, %c0_33] : memref<1x4x8x8xbf16, #tpu.memory_space<vmem>>, vector<1x1x8x8xbf16>
    %46 = vector.shape_cast %45 : vector<1x1x8x8xbf16> to vector<8x8xbf16>
    %47 = vector.shape_cast %44 : vector<8x8xbf16> to vector<1x1x8x8xbf16>
    tpu.vector_store %arg8[%c0_30, %c1_31, %c0_32, %c0_33], %47 {strides = array<i32>} : memref<1x4x8x8xbf16, #tpu.memory_space<vmem>>, vector<1x1x8x8xbf16>,
    %48 = vector.extract_strided_slice %22 {offsets = [0, 8], sizes = [8, 8], strides = [1, 1]} : vector<8x32xf32> to vector<8x8xf32>
    %49 = arith.truncf %48 : vector<8x8xf32> to vector<8x8xbf16>
    %c0_34 = arith.constant 0 : index
    %c1_35 = arith.constant 1 : index
    %c0_36 = arith.constant 0 : index
    %c0_37 = arith.constant 0 : index
    %50 = vector.load %arg9[%c0_34, %c1_35, %c0_36, %c0_37] : memref<1x4x8x8xbf16, #tpu.memory_space<vmem>>, vector<1x1x8x8xbf16>
    %51 = vector.shape_cast %50 : vector<1x1x8x8xbf16> to vector<8x8xbf16>
    %52 = vector.shape_cast %49 : vector<8x8xbf16> to vector<1x1x8x8xbf16>
    tpu.vector_store %arg9[%c0_34, %c1_35, %c0_36, %c0_37], %52 {strides = array<i32>} : memref<1x4x8x8xbf16, #tpu.memory_space<vmem>>, vector<1x1x8x8xbf16>,
    %53 = vector.extract_strided_slice %8 {offsets = [0, 16], sizes = [8, 8], strides = [1, 1]} : vector<8x32xf32> to vector<8x8xf32>
    %54 = arith.truncf %53 : vector<8x8xf32> to vector<8x8xbf16>
    %c0_38 = arith.constant 0 : index
    %c2_39 = arith.constant 2 : index
    %c0_40 = arith.constant 0 : index
    %c0_41 = arith.constant 0 : index
    %55 = vector.load %arg7[%c0_38, %c2_39, %c0_40, %c0_41] : memref<1x4x8x8xbf16, #tpu.memory_space<vmem>>, vector<1x1x8x8xbf16>
    %56 = vector.shape_cast %55 : vector<1x1x8x8xbf16> to vector<8x8xbf16>
    %57 = vector.shape_cast %54 : vector<8x8xbf16> to vector<1x1x8x8xbf16>
    tpu.vector_store %arg7[%c0_38, %c2_39, %c0_40, %c0_41], %57 {strides = array<i32>} : memref<1x4x8x8xbf16, #tpu.memory_space<vmem>>, vector<1x1x8x8xbf16>,
    %58 = vector.extract_strided_slice %15 {offsets = [0, 16], sizes = [8, 8], strides = [1, 1]} : vector<8x32xf32> to vector<8x8xf32>
    %59 = arith.truncf %58 : vector<8x8xf32> to vector<8x8xbf16>
    %c0_42 = arith.constant 0 : index
    %c2_43 = arith.constant 2 : index
    %c0_44 = arith.constant 0 : index
    %c0_45 = arith.constant 0 : index
    %60 = vector.load %arg8[%c0_42, %c2_43, %c0_44, %c0_45] : memref<1x4x8x8xbf16, #tpu.memory_space<vmem>>, vector<1x1x8x8xbf16>
    %61 = vector.shape_cast %60 : vector<1x1x8x8xbf16> to vector<8x8xbf16>
    %62 = vector.shape_cast %59 : vector<8x8xbf16> to vector<1x1x8x8xbf16>
    tpu.vector_store %arg8[%c0_42, %c2_43, %c0_44, %c0_45], %62 {strides = array<i32>} : memref<1x4x8x8xbf16, #tpu.memory_space<vmem>>, vector<1x1x8x8xbf16>,
    %63 = vector.extract_strided_slice %22 {offsets = [0, 16], sizes = [8, 8], strides = [1, 1]} : vector<8x32xf32> to vector<8x8xf32>
    %64 = arith.truncf %63 : vector<8x8xf32> to vector<8x8xbf16>
    %c0_46 = arith.constant 0 : index
    %c2_47 = arith.constant 2 : index
    %c0_48 = arith.constant 0 : index
    %c0_49 = arith.constant 0 : index
    %65 = vector.load %arg9[%c0_46, %c2_47, %c0_48, %c0_49] : memref<1x4x8x8xbf16, #tpu.memory_space<vmem>>, vector<1x1x8x8xbf16>
    %66 = vector.shape_cast %65 : vector<1x1x8x8xbf16> to vector<8x8xbf16>
    %67 = vector.shape_cast %64 : vector<8x8xbf16> to vector<1x1x8x8xbf16>
    tpu.vector_store %arg9[%c0_46, %c2_47, %c0_48, %c0_49], %67 {strides = array<i32>} : memref<1x4x8x8xbf16, #tpu.memory_space<vmem>>, vector<1x1x8x8xbf16>,
    %68 = vector.extract_strided_slice %8 {offsets = [0, 24], sizes = [8, 8], strides = [1, 1]} : vector<8x32xf32> to vector<8x8xf32>
    %69 = arith.truncf %68 : vector<8x8xf32> to vector<8x8xbf16>
    %c0_50 = arith.constant 0 : index
    %c3 = arith.constant 3 : index
    %c0_51 = arith.constant 0 : index
    %c0_52 = arith.constant 0 : index
    %70 = vector.load %arg7[%c0_50, %c3, %c0_51, %c0_52] : memref<1x4x8x8xbf16, #tpu.memory_space<vmem>>, vector<1x1x8x8xbf16>
    %71 = vector.shape_cast %70 : vector<1x1x8x8xbf16> to vector<8x8xbf16>
    %72 = vector.shape_cast %69 : vector<8x8xbf16> to vector<1x1x8x8xbf16>
    tpu.vector_store %arg7[%c0_50, %c3, %c0_51, %c0_52], %72 {strides = array<i32>} : memref<1x4x8x8xbf16, #tpu.memory_space<vmem>>, vector<1x1x8x8xbf16>,
    %73 = vector.extract_strided_slice %15 {offsets = [0, 24], sizes = [8, 8], strides = [1, 1]} : vector<8x32xf32> to vector<8x8xf32>
    %74 = arith.truncf %73 : vector<8x8xf32> to vector<8x8xbf16>
    %c0_53 = arith.constant 0 : index
    %c3_54 = arith.constant 3 : index
    %c0_55 = arith.constant 0 : index
    %c0_56 = arith.constant 0 : index
    %75 = vector.load %arg8[%c0_53, %c3_54, %c0_55, %c0_56] : memref<1x4x8x8xbf16, #tpu.memory_space<vmem>>, vector<1x1x8x8xbf16>
    %76 = vector.shape_cast %75 : vector<1x1x8x8xbf16> to vector<8x8xbf16>
    %77 = vector.shape_cast %74 : vector<8x8xbf16> to vector<1x1x8x8xbf16>
    tpu.vector_store %arg8[%c0_53, %c3_54, %c0_55, %c0_56], %77 {strides = array<i32>} : memref<1x4x8x8xbf16, #tpu.memory_space<vmem>>, vector<1x1x8x8xbf16>,
    %78 = vector.extract_strided_slice %22 {offsets = [0, 24], sizes = [8, 8], strides = [1, 1]} : vector<8x32xf32> to vector<8x8xf32>
    %79 = arith.truncf %78 : vector<8x8xf32> to vector<8x8xbf16>
    %c0_57 = arith.constant 0 : index
    %c3_58 = arith.constant 3 : index
    %c0_59 = arith.constant 0 : index
    %c0_60 = arith.constant 0 : index
    %80 = vector.load %arg9[%c0_57, %c3_58, %c0_59, %c0_60] : memref<1x4x8x8xbf16, #tpu.memory_space<vmem>>, vector<1x1x8x8xbf16>
    %81 = vector.shape_cast %80 : vector<1x1x8x8xbf16> to vector<8x8xbf16>
    %82 = vector.shape_cast %79 : vector<8x8xbf16> to vector<1x1x8x8xbf16>
    tpu.vector_store %arg9[%c0_57, %c3_58, %c0_59, %c0_60], %82 {strides = array<i32>} : memref<1x4x8x8xbf16, #tpu.memory_space<vmem>>, vector<1x1x8x8xbf16>,
    return
  }
  func.func @transform_0(%arg0: i32, %arg1: i32) -> (i32, i32, i32) {
    %c0_i32 = arith.constant 0 : i32
    %c0_i32_0 = arith.constant 0 : i32
    return %arg0, %arg1, %c0_i32 : i32, i32, i32
  }
  func.func @transform_1(%arg0: i32, %arg1: i32) -> (i32, i32) {
    %c0_i32 = arith.constant 0 : i32
    %c0_i32_0 = arith.constant 0 : i32
    %c0_i32_1 = arith.constant 0 : i32
    return %c0_i32, %c0_i32_0 : i32, i32
  }
  func.func @transform_2(%arg0: i32, %arg1: i32) -> (i32, i32) {
    %c0_i32 = arith.constant 0 : i32
    %c0_i32_0 = arith.constant 0 : i32
    %c0_i32_1 = arith.constant 0 : i32
    return %c0_i32, %c0_i32_0 : i32, i32
  }
  func.func @transform_3(%arg0: i32, %arg1: i32) -> (i32, i32) {
    %c0_i32 = arith.constant 0 : i32
    %c0_i32_0 = arith.constant 0 : i32
    %c0_i32_1 = arith.constant 0 : i32
    return %c0_i32, %c0_i32_0 : i32, i32
  }
  func.func @transform_4(%arg0: i32, %arg1: i32) -> (i32, i32) {
    %c0_i32 = arith.constant 0 : i32
    %c0_i32_0 = arith.constant 0 : i32
    %c0_i32_1 = arith.constant 0 : i32
    return %c0_i32, %c0_i32_0 : i32, i32
  }
  func.func @transform_5(%arg0: i32, %arg1: i32) -> (i32, i32, i32, i32) {
    %c0_i32 = arith.constant 0 : i32
    %c0_i32_0 = arith.constant 0 : i32
    %c0_i32_1 = arith.constant 0 : i32
    return %arg0, %c0_i32, %arg1, %c0_i32_0 : i32, i32, i32, i32
  }
  func.func @transform_6(%arg0: i32, %arg1: i32) -> (i32, i32, i32, i32) {
    %c0_i32 = arith.constant 0 : i32
    %c0_i32_0 = arith.constant 0 : i32
    %c0_i32_1 = arith.constant 0 : i32
    return %arg0, %c0_i32, %arg1, %c0_i32_0 : i32, i32, i32, i32
  }
  func.func @transform_7(%arg0: i32, %arg1: i32) -> (i32, i32, i32, i32) {
    %c0_i32 = arith.constant 0 : i32
    %c0_i32_0 = arith.constant 0 : i32
    %c0_i32_1 = arith.constant 0 : i32
    return %arg0, %c0_i32, %arg1, %c0_i32_0 : i32, i32, i32, i32
  }
}

</mosaic_0001>

<bundles_post_ra>
// kernel: tpu_custom_call.1
= control target key start
LH: loop header
LB: loop body
LE: loop exit
PB: predicated region body
PF: predicated region fallthrough
CT: control target
= control target key end

     0   :  { %s1705_s0 = inlined_call_operand.hbm [shape: bf16[2,8,32], index: 0, kind: input, shape index: {}]   ;;  %s1706_s1 = inlined_call_operand.hbm [shape: bf16[32,32], index: 1, kind: input, shape index: {}]   ;;  %s1707_s2 = inlined_call_operand.hbm [shape: bf16[32,32], index: 2, kind: input, shape index: {}]   ;;  %s1708_s3 = inlined_call_operand.hbm [shape: bf16[32,32], index: 3, kind: input, shape index: {}]   ;;  %s1709_s4 = inlined_call_operand.vmem [shape: f32[3,32], index: 4, kind: input, shape index: {}]   ;;  %s1710_s5 = inlined_call_operand.hbm [shape: bf16[2,4,8,8], index: 5, kind: output, shape index: {0}]   ;;  %s1711_s6 = inlined_call_operand.hbm [shape: bf16[2,4,8,8], index: 6, kind: output, shape index: {1}]   ;;  %s1712_s7 = inlined_call_operand.hbm [shape: bf16[2,4,8,8], index: 7, kind: output, shape index: {2}]  }
   0x1   :  { %1716 = sst [smem:[#allocation19_spill]] %s1706_s1 }
   0x2   :  { %1717 = sst [smem:[#allocation20_spill]] %s1707_s2 }
   0x3   :  { %1718 = sst [smem:[#allocation21_spill]] %s1708_s3 }
   0x4   :  { %13 = vsyncpa [#allocation3], 0 }
   0x5   :  { %15 = vsyncpa [#allocation3 + $0x1], 0 }
   0x6   :  { %16 = vsyncpa [#allocation6], 0 }
   0x7   :  { %17 = vsyncpa [#allocation9], 0 }
   0x8   :  { %18 = vsyncpa [#allocation4], 0 }
   0x9   :  { %20 = vsyncpa [#allocation4 + $0x1], 0 }
   0xa   :  { %21 = vsyncpa [#allocation12], 0 }
   0xb   :  { %23 = vsyncpa [#allocation12 + $0x1], 0  ;;  %s1381_s24 = smov 0   ;;  %s1383_s25 = smov 0  }
   0xc   :  { %s1385_s26 = smov 0   ;;  %s1387_s27 = smov 0  }
   0xd   :  { %s1389_s28 = smov 0   ;;  %s1391_s29 = smov 0  }
   0xe LB: > { %s1412_s30 = sadd.s32 4294967295, %s1323_s29   ;;  %s1715_s8 = sadd.s32 4294967294, %s1323_s29   ;;  %s1323_s29 = sphi %s1391_s29, %s29_s29   ;;  %s1319_s28 = sphi %s1389_s28, %s1742_s28   ;;  %s1315_s27 = sphi %s1387_s27, %s1741_s27   ;;  %s1311_s26 = sphi %s1385_s26, %s1740_s26   ;;  %s1307_s25 = sphi %s1383_s25, %s1739_s25   ;;  %s1303_s24 = sphi %s1381_s24, %s1738_s24  }
   0xf   : > { %p63_p0 = scmp.ne.s32.totalorder %s1307_s25, %s1303_s24  ;;  %p1713_p1 = scmp.eq.s32.totalorder %s1412_s30, 0 }
  0x10   : > { %p179_p3 = scmp.eq.s32.totalorder %s1715_s8, 1  ;;  %p866_p5 = scmp.ge.s32.totalorder %s1323_s29, 1 }
  0x11   : > { %p1423_p4 = por %p1713_p1, %p63_p0  ;;  %p242_p7 = scmp.lt.s32.totalorder %s1323_s29, 3 }
  0x12   : > { %p1428_p6 = por %p179_p3, %p63_p0  ;;  %s1325_s12 = smov [#allocation5]  }
  0x13   : > { %s1719_s9 = scalar_select %p1423_p4, 1, 0 }
  0x14   : > { %s1720_s10 = scalar_select %p1428_p6, 1, 0 }
  0x15   : > { %p1433_p8 = pnand %p866_p5, %p242_p7  ;;  %s254_s13 = sshll.u32 %s1325_s12, 4  ;;  %s255_s13 = int_to_ptr.vmem [resolvable:$true] %s254_s13 }
  0x16   : > { %s1326_s15 = smov [#allocation7]   ;;  %s1327_s17 = smov [#allocation8]  }
  0x17   : > { %p975_p9 = pneg %p1433_p8  ;;  %s267_s16 = sshll.u32 %s1326_s15, 4  ;;  %s268_s16 = int_to_ptr.vmem [resolvable:$true] %s267_s16 }
  0x18   : > { %s280_s18 = sshll.u32 %s1327_s17, 4  ;;  %s1084_s19 = scalar_lea.vmem %s255_s13, 256  ;;  %s281_s18 = int_to_ptr.vmem [resolvable:$true] %s280_s18 }
  0x19   : > { %p1442_p11 = pnand %p975_p9, %p1713_p1  ;;  %p1085_p13 = scmp.ne.s32.totalorder %s255_s13, %s1084_s19 }
  0x1a   : > { %p1092_p5 = scmp.lt.s32.totalorder %s255_s13, %s255_s13  ;;  %p1093_p7 = scmp.lt.s32.totalorder %s1084_s19, %s1084_s19 }
  0x1b   : > { %p1075_p12 = pneg %p1442_p11 }
  0x1c   : > { %p1094_p9 = por %p1093_p7, %p1092_p5 }
  0x1d   : > { %p1087_p0 = pnand %p1085_p13, %p1075_p12 }
  0x1f   : > { %p1088_p3 = pneg %p1087_p0 }
  0x21   : > { %p1095_p10 = pnand %p1094_p9, %p1088_p3 }
  0x23   : > { %1098 = shalt.err (!%p1095_p10)
}
  0x24   : > { %s1328_s20 = smov 64   ;;  %s1329_s21 = smov 4  }
  0x25   : > { %s1723_s1 = sld [smem:[#allocation19_spill]]  ;;  %s1110_s12 = scalar_lea.vmem %s268_s16, 256 }
  0x26   : > { %p1111_p1 = scmp.ne.s32.totalorder %s268_s16, %s1110_s12  ;;  %p1118_p2 = scmp.lt.s32.totalorder %s268_s16, %s268_s16 }
  0x27   : > { %p1119_p6 = scmp.lt.s32.totalorder %s1110_s12, %s1110_s12 }
  0x28   : > { %p1113_p13 = pnand %p1111_p1, %p1075_p12 }
  0x29   : > { %p1120_p5 = por %p1119_p6, %p1118_p2 }
  0x2a   : > { %p1114_p0 = pneg %p1113_p13 }
  0x2b   : > { %978 = dma.hbm_to_vmem [thread:$0]  (!%p1442_p11), %s1723_s1, 256, %s255_s13, [#allocation6], %s1328_s20, %s1328_s20, %s1329_s21  }
  0x2c   : > { %p1121_p3 = pnand %p1120_p5, %p1114_p0 }
  0x2e   : > { %1124 = shalt.err (!%p1121_p3)
}
  0x2f   : > { %s1724_s2 = sld [smem:[#allocation20_spill]]  ;;  %s1136_s13 = scalar_lea.vmem %s281_s18, 256 }
  0x30   : > { %p1137_p10 = scmp.ne.s32.totalorder %s281_s18, %s1136_s13  ;;  %p1144_p9 = scmp.lt.s32.totalorder %s281_s18, %s281_s18 }
  0x31   : > { %p1145_p13 = scmp.lt.s32.totalorder %s1136_s13, %s1136_s13 }
  0x32   : > { %p1139_p7 = pnand %p1137_p10, %p1075_p12 }
  0x33   : > { %p1146_p4 = por %p1145_p13, %p1144_p9 }
  0x34   : > { %p1140_p1 = pneg %p1139_p7 }
  0x35   : > { %981 = dma.hbm_to_vmem [thread:$0]  (!%p1442_p11), %s1724_s2, 256, %s268_s16, [#allocation6], %s1328_s20, %s1328_s20, %s1329_s21  }
  0x36   : > { %p1147_p2 = pnand %p1146_p4, %p1140_p1 }
  0x38   : > { %1150 = shalt.err (!%p1147_p2)
}
  0x39   : > { %s1725_s3 = sld [smem:[#allocation21_spill]]  ;;  %s50_s16 = sadd.s32 1, %s1311_s26 }
  0x3a   : > { %s41_s23 = sadd.s32 1, %s1319_s28  ;;  %p57_p4 = scmp.ne.s32.totalorder %s1311_s26, %s1307_s25 }
  0x3b   : > { %p43_p6 = scmp.ge.s32.totalorder %s41_s23, 2  ;;  %p58_p12 = scmp.eq.s32.totalorder %s1323_s29, 0 }
  0x3c   : > { %p1726_p0 = scmp.eq.s32.totalorder %s1412_s30, 1  ;;  %p1002_p3 = scmp.lt.s32.totalorder %s1323_s29, 2 }
  0x3d   : > { %s1744_s23 = smov (%p43_p6, %s41_s23), 0  ;;  %p59_p10 = por %p58_p12, %p57_p4 }
  0x3e   : > { %p1479_p5 = por %p1726_p0, %p57_p4  ;;  %s297_s12 = sand.u32 1, %s1311_s26  }
  0x3f   : > { %984 = dma.hbm_to_vmem [thread:$0]  (!%p1442_p11), %s1725_s3, 256, %s281_s18, [#allocation9], %s1328_s20, %s1328_s20, %s1329_s21  }
  0x40   : > { %s45_s15 = ssub.s32 %s1319_s28, %s1744_s23  ;;  %s871_s18 = sshll.u32 %s297_s12, 2 }
  0x41   : > { %p48_p7 = scmp.eq.s32.totalorder %s45_s15, 0  ;;  %s872_s20 = sshll.u32 %s1319_s28, 6 }
  0x42   : > { %s307_s19 = scalar_lea.hbm %s1705_s0, %s872_s20  ;;  %s301_s22 = scalar_lea.vmem [#allocation2], %s871_s18 }
  0x43   : > { %s1491_s21 = scalar_select %p48_p7, %s1311_s26, %s50_s16  }
  0x44   : > { %s309_s8 = sshll.u32 %s301_s22, 4  ;;  %p1498_p11 = pnand %p1002_p3, %p59_p10  ;;  %s310_s8 = int_to_ptr.vmem [resolvable:$true] %s309_s8 }
  0x45   : > { %s298_s2 = scalar_lea.sflag [#allocation3], %s297_s12  ;;  %s1164_s15 = scalar_lea.vmem %s310_s8, 64 }
  0x46   : > { %p1153_p1 = pneg %p1498_p11  ;;  %p1165_p9 = scmp.ne.s32.totalorder %s310_s8, %s1164_s15 }
  0x47   : > { %s1330_s16 = smov [#allocation2]  }
  0x48   : > { %p1167_p13 = pnand %p1165_p9, %p1153_p1  ;;  %s1169_s3 = sshll.u32 %s1330_s16, 4  ;;  %s1170_s3 = int_to_ptr.vmem [resolvable:$false] %s1169_s3 }
  0x49   : > { %s1171_s20 = scalar_lea.vmem %s1170_s3, 128  ;;  %p1172_p4 = scmp.lt.s32.totalorder %s310_s8, %s1170_s3 }
  0x4a   : > { %p1168_p2 = pneg %p1167_p13  ;;  %p1173_p6 = scmp.lt.s32.totalorder %s1171_s20, %s1164_s15 }
  0x4c   : > { %p1174_p12 = por %p1173_p6, %p1172_p4 }
  0x4e   : > { %p1175_p0 = pnand %p1174_p12, %p1168_p2 }
  0x50   : > { %1178 = shalt.err (!%p1175_p0)
}
  0x51   : > { %988 = dma.hbm_to_vmem [thread:$0]  (!%p1498_p11), %s307_s19, 64, %s310_s8, %s298_s2  }
  0x52   : > { %318 = sbr.rel (%p1433_p8) target bundleno = 480 (0x1e0), region = 40  ;;  %s1509_s12 = sand.u32 (!%p1433_p8), 1, %s1307_s25  }
  0x53   : > { %s874_s18 = sshll.u32 (!%p1433_p8), %s1509_s12, 2  ;;  %s321_s17 = scalar_lea.sflag (!%p1433_p8), [#allocation3], %s1509_s12 }
  0x54   : > { %s324_s13 = scalar_lea.vmem (!%p1433_p8), [#allocation2], %s874_s18  ;;  %p1729_p3 = scmp.ne.s32.totalorder (!%p1433_p8), %s1719_s9, 0 }
  0x57   : > { %1282 = dma.done.wait (%p1729_p3), %s321_s17, 64  }
  0x58   : > { %1284 = vsyncadd (%p1729_p3), %s321_s17, 4294967232  ;;  %p1730_p10 = scmp.eq.s32.totalorder %s1412_s30, 0 }
  0x5a   : > { %1286 = dma.done.wait (%p1730_p10), [#allocation6], 512   ;;  %p1731_p7 = pmov %p1730_p10 }
  0x5c   : > { %1288 = vsyncadd (%p1731_p7), [#allocation6], 4294966784  ;;  %p1732_p8 = pmov %p1731_p7 }
  0x5d   : > { %p1733_p11 = pmov %p1731_p7 }
  0x5e   : > { %1290 = dma.done.wait (%p1732_p8), [#allocation9], 256  }
  0x5f   : > { %1292 = vsyncadd (%p1733_p11), [#allocation9], 4294967040  ;;  %v1331_v0 = vmov 0.0   ;;  %vm1332_vm0 = vmmov 0   ;;  %v1067_v1 = vld [vmem:[#allocation5 + $0x8] sm:$0xff]   ;;  %v1068_v2 = vld [vmem:[#allocation7 + $0x8] sm:$0xff]  }
  0x60   : > { %931 = vmatprep.subr.bf16.mxu0 %v1331_v0  ;;  %939 = vmatprep.subr.bf16.mxu1 %v1331_v0  ;;  %v1069_v3 = vld [vmem:[#allocation5] sm:$0xff]   ;;  %v1070_v4 = vld [vmem:[#allocation7] sm:$0xff]   ;;  %v378_v5 = vld [vmem:[%s324_s13] sm:$0xf]  ;;  %vm400_vm1 = vcmask 261120   ;;  %s1532_s3 = sshll.u32 %s1509_s12, 4 }
  0x61   : > { %935 = vmatprep.mubr.msk.bf16.mxu0 %vm1332_vm0, %v1331_v0  ;;  %943 = vmatprep.mubr.msk.bf16.mxu1 %vm1332_vm0, %v1331_v0  ;;  %v1071_v6 = vld [vmem:[#allocation8 + $0x8] sm:$0xff]   ;;  %v1072_v7 = vld [vmem:[#allocation8] sm:$0xff]   ;;  %v881_v8 = vld [vmem:[%s1709_s4] ss:$0 sm:$0xff]  ;;  %vm567_vm2 = vcmask 60416   ;;  %s1538_s11 = scalar_lea.vmem [#allocation10], %s1532_s3 }
  0x62   : > { %932 = vmatpush3.bf16.msra.mxu0 %v1067_v1  ;;  %940 = vmatpush3.bf16.msra.mxu1 %v1068_v2  ;;  %v885_v9 = vld [vmem:[%s1709_s4 + $0x1] ss:$0 sm:$0xff]  ;;  %s1543_s19 = scalar_lea.vmem [#allocation11], %s1532_s3  ;;  %s1333_s22 = smov 104   ;;  %v889_v21 = vld [vmem:[%s1709_s4 + $0x2] ss:$0 sm:$0xff] }
  0x63   : > { %933 = vmatprep.subr.bf16.mxu0 %v1331_v0  ;;  %941 = vmatprep.subr.bf16.mxu1 %v1331_v0  ;;  %s1334_s15 = smov 120   ;;  %s1335_s18 = smov 112  }
  0x64   : > { %s1551_s17 = scalar_lea.vmem [#allocation13], %s1532_s3  ;;  %s669_s13 = sshll.u32 %s1543_s19, 4  ;;  %s1560_s13 = int_to_ptr.vmem [resolvable:$true] %s669_s13 }
  0x65   : > { %s632_s1 = sand.u32 1, %s1412_s30   ;;  %s1558_s2 = sshll.u32 %s1315_s27, 8 }
  0x66   : > { %934 = vmatpush3.bf16.msra.mxu0 %v1069_v3  ;;  %942 = vmatpush3.bf16.msra.mxu1 %v1070_v4  ;;  %s1570_s9 = scalar_lea.hbm %s1711_s6, %s1558_s2  ;;  %s1576_s27 = scalar_lea.sflag [#allocation12], %s632_s1 }
  0x67   : > { %947 = vmatprep.subr.bf16.mxu0 %v1331_v0  ;;  %s1179_s30 = scalar_lea.vmem %s1560_s13, 256 }
  0x68   : > { %p1180_p1 = scmp.ne.s32.totalorder %s1560_s13, %s1179_s30 }
  0x69   : > { %936 = vmatmul.mubr.msk.bf16.vlgmr.msra.gmra.mxu0 %vm400_vm1, %v378_v5  ;;  %944 = vmatmul.mubr.msk.bf16.vlgmr.msra.gmra.mxu1 %vm400_vm1, %v378_v5 }
  0x6a   : > { %948 = vmatpush3.bf16.msra.mxu0 %v1071_v6  ;;  %951 = vmatprep.mubr.msk.bf16.mxu0 %vm1332_vm0, %v1331_v0  ;;  %p1181_p9 = pnand %p1180_p1, %p1479_p5 }
  0x6b   : > { %949 = vmatprep.subr.bf16.mxu0 %v1331_v0 }
  0x6c   : > { %p1182_p13 = pneg %p1181_p9 }
  0x6e   : > { %950 = vmatpush3.bf16.msra.mxu0 %v1072_v7 }
  0x71   : > { %952 = vmatmul.mubr.msk.bf16.vlgmr.msra.gmra.mxu0 %vm400_vm1, %v378_v5 }
 0x129   : > { %v438_v10 = vpop.f32.mrf.mxu0  ;;  %v499_v12 = vpop.f32.mrf.mxu1 }
 0x12a   : > { %v439_v11 = vadd.f32 %v881_v8, %v438_v10  ;;  %v500_v13 = vadd.f32 %v885_v9, %v499_v12 }
 0x12b   : > { %v937_v14 = vpop.f32.mrf.mxu0  ;;  %v945_v16 = vpop.f32.mrf.mxu1 }
 0x12c   : > { %v566_v15 = vpack.c.bf16 %v439_v11, %v439_v11  ;;  %v569_v17 = vpack.c.bf16 %v500_v13, %v500_v13 }
 0x12d   : > { %v441_v18 = vpop.f32.mrf.mxu0  ;;  %v502_v19 = vpop.f32.mrf.mxu1 }
 0x12e   : > { %568 = vst.msk [vmem:[%s1538_s11] sm:$0xf] %vm567_vm2, %v566_v15  ;;  %570 = vst.msk [vmem:[%s1543_s19] sm:$0xf] %vm567_vm2, %v569_v17  ;;  %617 = vrot.lane.b32.xlu1 %v569_v17, %s1333_s22  ;;  %584 = vrot.lane.b32.xlu0 %v569_v17, %s1334_s15 }
 0x12f   : > { %v938_v20 = vpop.f32.mrf.mxu0  ;;  %v946_v22 = vpop.f32.mrf.mxu1 }
 0x131   : > { %v560_v23 = vpop.f32.mrf.mxu0 }
 0x132   : > { %v561_v24 = vadd.f32 %v889_v21, %v560_v23  ;;  %602 = vrot.lane.b32.xlu0 %v569_v17, %s1335_s18  ;;  %576 = vrot.lane.b32.xlu1 %v566_v15, %s1334_s15 }
 0x133   : > { %v953_v25 = vpop.f32.mrf.mxu0 }
 0x134   : > { %v571_v26 = vpack.c.bf16 %v561_v24, %v561_v24 }
 0x135   : > { %v563_v27 = vpop.f32.mrf.mxu0 }
 0x136   : > { %572 = vst.msk [vmem:[%s1551_s17] sm:$0xf] %vm567_vm2, %v571_v26  ;;  %597 = vrot.lane.b32.xlu1 %v566_v15, %s1335_s18  ;;  %592 = vrot.lane.b32.xlu0 %v571_v26, %s1334_s15 }
 0x137   : > { %v954_v28 = vpop.f32.mrf.mxu0 }
 0x13a   : > { %612 = vrot.lane.b32.xlu1 %v566_v15, %s1333_s22  ;;  %607 = vrot.lane.b32.xlu0 %v571_v26, %s1335_s18 }
 0x13e   : > { %622 = vrot.lane.b32.xlu0 %v571_v26, %s1333_s22  ;;  %s1336_s22 = smov [#allocation11]  }
 0x13f   : > { %s1183_s15 = sshll.u32 %s1336_s22, 4  ;;  %s1184_s15 = int_to_ptr.vmem [resolvable:$false] %s1183_s15 }
 0x140   : > { %s1185_s16 = scalar_lea.vmem %s1184_s15, 512  ;;  %p1186_p2 = scmp.lt.s32.totalorder %s1560_s13, %s1184_s15 }
 0x141   : > { %p1187_p4 = scmp.lt.s32.totalorder %s1185_s16, %s1179_s30 }
 0x143   : > { %p1188_p6 = por %p1187_p4, %p1186_p2 }
 0x145   : > { %p1189_p12 = pnand %p1188_p6, %p1182_p13 }
 0x1a0   : > { %v618_v29 = vpop.permute.xlu1 %617  ;;  %v585_v30 = vpop.permute.xlu0 %584 }
 0x1a1   : > { %903 = vst.msk [vmem:[%s1543_s19 + $0xc] sm:$0xf] %vm567_vm2, %v618_v29  ;;  %896 = vst.msk [vmem:[%s1543_s19 + $0x4] sm:$0xf] %vm567_vm2, %v585_v30 }
 0x1a4   : > { %v603_v31 = vpop.permute.xlu0 %602  ;;  %v577_v32 = vpop.permute.xlu1 %576 }
 0x1a5   : > { %900 = vst.msk [vmem:[%s1543_s19 + $0x8] sm:$0xf] %vm567_vm2, %v603_v31  ;;  %894 = vst.msk [vmem:[%s1538_s11 + $0x4] sm:$0xf] %vm567_vm2, %v577_v32 }
 0x1a6   : > { %1192 = shalt.err (!%p1189_p12)
}
 0x1a7   : > { %s1193_s19 = scalar_lea.hbm %s1570_s9, 256  ;;  %s1197_s1 = scalar_lea.hbm %s1711_s6, 512 }
 0x1a8   : > { %p1194_p0 = scmp.ne.s32.totalorder %s1570_s9, %s1193_s19  ;;  %p1198_p7 = scmp.lt.s32.totalorder %s1570_s9, %s1711_s6 }
 0x1a9   : > { %p1199_p8 = scmp.lt.s32.totalorder %s1197_s1, %s1193_s19 }
 0x1aa   : > { %p1195_p3 = pnand %p1194_p0, %p1479_p5 }
 0x1ab   : > { %p1200_p11 = por %p1199_p8, %p1198_p7 }
 0x1ac   : > { %p1196_p10 = pneg %p1195_p3 }
 0x1ae   : > { %p1201_p1 = pnand %p1200_p11, %p1196_p10 }
 0x1b0   : > { %1204 = shalt.err (!%p1201_p1)
}
 0x1b1   : > { %s1337_s30 = smov 64   ;;  %s1338_s22 = smov 4   ;;  %v598_v33 = vpop.permute.xlu1 %597  ;;  %v593_v34 = vpop.permute.xlu0 %592 }
 0x1b2   : > { %970 = dma.vmem_to_hbm [thread:$0]  (%p1479_p5), %s1560_s13, 256, %s1570_s9, %s1576_s27, %s1337_s30, %s1337_s30, %s1338_s22  }
 0x1b3   : > { %s652_s15 = sshll.u32 %s1538_s11, 4  ;;  %899 = vst.msk [vmem:[%s1538_s11 + $0x8] sm:$0xf] %vm567_vm2, %v598_v33  ;;  %898 = vst.msk [vmem:[%s1551_s17 + $0x4] sm:$0xf] %vm567_vm2, %v593_v34  ;;  %s1613_s20 = scalar_lea.hbm %s1710_s5, %s1558_s2  ;;  %s1607_s15 = int_to_ptr.vmem [resolvable:$true] %s652_s15 }
 0x1b4   : > { %s628_s13 = scalar_lea.sflag [#allocation4], %s1509_s12  ;;  %s1205_s9 = scalar_lea.vmem %s1607_s15, 256 }
 0x1b5   : > { %v613_v35 = vpop.permute.xlu1 %612  ;;  %v608_v36 = vpop.permute.xlu0 %607  ;;  %p1206_p9 = scmp.ne.s32.totalorder %s1607_s15, %s1205_s9  ;;  %s1339_s1 = smov [#allocation10]  }
 0x1b6   : > { %902 = vst.msk [vmem:[%s1538_s11 + $0xc] sm:$0xf] %vm567_vm2, %v613_v35  ;;  %901 = vst.msk [vmem:[%s1551_s17 + $0x8] sm:$0xf] %vm567_vm2, %v608_v36  ;;  %s1209_s3 = sshll.u32 %s1339_s1, 4  ;;  %s1210_s3 = int_to_ptr.vmem [resolvable:$false] %s1209_s3 }
 0x1b7   : > { %p1207_p13 = pnand %p1206_p9, %p1479_p5  ;;  %s1211_s8 = scalar_lea.vmem %s1210_s3, 512 }
 0x1b8   : > { %p1212_p4 = scmp.lt.s32.totalorder %s1607_s15, %s1210_s3  ;;  %p1213_p6 = scmp.lt.s32.totalorder %s1211_s8, %s1205_s9 }
 0x1b9   : > { %p1208_p2 = pneg %p1207_p13 }
 0x1ba   : > { %p1214_p12 = por %p1213_p6, %p1212_p4 }
 0x1bc   : > { %p1215_p0 = pnand %p1214_p12, %p1208_p2 }
 0x1be   : > { %1218 = shalt.err (!%p1215_p0)
}
 0x1bf   : > { %s1219_s11 = scalar_lea.hbm %s1613_s20, 256  ;;  %s1223_s19 = scalar_lea.hbm %s1710_s5, 512 }
 0x1c0   : > { %p1220_p3 = scmp.ne.s32.totalorder %s1613_s20, %s1219_s11  ;;  %p1224_p8 = scmp.lt.s32.totalorder %s1613_s20, %s1710_s5 }
 0x1c1   : > { %p1225_p11 = scmp.lt.s32.totalorder %s1223_s19, %s1219_s11 }
 0x1c2   : > { %p1221_p10 = pnand %p1220_p3, %p1479_p5 }
 0x1c3   : > { %p1226_p1 = por %p1225_p11, %p1224_p8 }
 0x1c4   : > { %p1222_p7 = pneg %p1221_p10 }
 0x1c6   : > { %p1227_p9 = pnand %p1226_p1, %p1222_p7 }
 0x1c8   : > { %1230 = shalt.err (!%p1227_p9)
}
 0x1c9   : > { %969 = dma.vmem_to_hbm [thread:$0]  (%p1479_p5), %s1607_s15, 256, %s1613_s20, %s628_s13, %s1337_s30, %s1337_s30, %s1338_s22   ;;  %v623_v37 = vpop.permute.xlu0 %622 }
 0x1ca   : > { %s1734_s9 = sshll.u32 %s1551_s17, 4  ;;  %s1652_s8 = scalar_lea.hbm %s1712_s7, %s1558_s2  ;;  %904 = vst.msk [vmem:[%s1551_s17 + $0xc] sm:$0xf] %vm567_vm2, %v623_v37  ;;  %s1646_s9 = int_to_ptr.vmem [resolvable:$true] %s1734_s9 }
 0x1cb   : > { %s1231_s11 = scalar_lea.vmem %s1646_s9, 256  ;;  %s1340_s15 = smov [#allocation13]  }
 0x1cc   : > { %p1232_p13 = scmp.ne.s32.totalorder %s1646_s9, %s1231_s11  ;;  %s1235_s20 = sshll.u32 %s1340_s15, 4  ;;  %s1236_s20 = int_to_ptr.vmem [resolvable:$false] %s1235_s20 }
 0x1cd   : > { %s1237_s13 = scalar_lea.vmem %s1236_s20, 512  ;;  %p1238_p6 = scmp.lt.s32.totalorder %s1646_s9, %s1236_s20 }
 0x1ce   : > { %p1233_p2 = pnand %p1232_p13, %p1479_p5  ;;  %p1239_p12 = scmp.lt.s32.totalorder %s1237_s13, %s1231_s11 }
 0x1d0   : > { %p1234_p4 = pneg %p1233_p2  ;;  %p1240_p0 = por %p1239_p12, %p1238_p6 }
 0x1d2   : > { %p1241_p3 = pnand %p1240_p0, %p1234_p4 }
 0x1d4   : > { %1244 = shalt.err (!%p1241_p3)
}
 0x1d5   : > { %s1245_s2 = scalar_lea.hbm %s1652_s8, 256  ;;  %s1249_s16 = scalar_lea.hbm %s1712_s7, 512 }
 0x1d6   : > { %p1246_p10 = scmp.ne.s32.totalorder %s1652_s8, %s1245_s2  ;;  %p1250_p11 = scmp.lt.s32.totalorder %s1652_s8, %s1712_s7 }
 0x1d7   : > { %p1251_p1 = scmp.lt.s32.totalorder %s1249_s16, %s1245_s2 }
 0x1d8   : > { %p1247_p7 = pnand %p1246_p10, %p1479_p5 }
 0x1d9   : > { %p1252_p9 = por %p1251_p1, %p1250_p11 }
 0x1da   : > { %p1248_p8 = pneg %p1247_p7 }
 0x1dc   : > { %p1253_p13 = pnand %p1252_p9, %p1248_p8 }
 0x1de   : > { %1256 = shalt.err (!%p1253_p13)
}
 0x1df   : > { %971 = dma.vmem_to_hbm [thread:$0]  (%p1479_p5), %s1646_s9, 256, %s1652_s8, %s1576_s27, %s1337_s30, %s1337_s30, %s1338_s22  }
 0x1e0 PF: > { %s701_s18 = sand.u32 1, %s1303_s24   ;;  %p1735_p2 = scmp.ne.s32.totalorder %s1720_s10, 0 }
 0x1e1   : > { %p1736_p4 = scmp.ge.s32.totalorder %s1323_s29, 2  ;;  %s702_s3 = scalar_lea.sflag [#allocation4], %s701_s18 }
 0x1e3   : > { %p990_p6 = pnand %p1736_p4, %p1735_p2 }
 0x1e5   : > { %p991_p12 = pneg %p990_p6 }
 0x1e7   : > { %1294 = dma.done.wait (%p991_p12), %s702_s3, 256  }
 0x1e8   : > { %1296 = vsyncadd (%p991_p12), %s702_s3, 4294967040  ;;  %s1737_s14 = sadd.s32 4294967294, %s1323_s29  }
 0x1e9   : > { %s710_s11 = sand.u32 1, %s1737_s14  }
 0x1ea   : > { %s711_s15 = scalar_lea.sflag [#allocation12], %s710_s11 }
 0x1eb   : > { %1298 = dma.done.wait (%p991_p12), %s711_s15, 512  }
 0x1ec   : > { %1300 = vsyncadd (%p991_p12), %s711_s15, 4294966784  ;;  %s29_s29 = sadd.s32 1, %s1323_s29   ;;  %s1738_s24 = smov %s1307_s25 }
 0x1ed   : > { %p26_p5 = scmp.ge.s32.totalorder %s29_s29, 4   ;;  %s1739_s25 = smov %s1311_s26 }
 0x1ee   : > { %s1740_s26 = smov %s1491_s21  ;;  %s1741_s27 = smov %s1319_s28 }
 0x1ef   : > { %s1742_s28 = smov %s1744_s23  ;;  %28 = sbr.rel (!%p26_p5) target bundleno = 14 (0xe), region = 138 }
 0x1f4   :  { %725 = vsyncpa [#allocation3], 1 }
 0x1f5   :  { %727 = vsyncpa [#allocation3 + $0x1], 1 }
 0x1f6   :  { %728 = vsyncpa [#allocation6], 1 }
 0x1f7   :  { %729 = vsyncpa [#allocation9], 1 }
 0x1f8   :  { %730 = vsyncpa [#allocation4], 1 }
 0x1f9   :  { %732 = vsyncpa [#allocation4 + $0x1], 1 }
 0x1fa   :  { %733 = vsyncpa [#allocation12], 1 }
 0x1fb   :  { %735 = vsyncpa [#allocation12 + $0x1], 1 }

</bundles_post_ra>
